<compile_context>
chip_gen: v6e
topology: v6e:2x2x1
jax: 0.10.0
libtpu: 0.0.40
codegen_flags: <defaults>
</compile_context>

<pallas_src>
import functools

import jax
import jax.numpy as jnp
from jax.experimental import pallas as pl
from jax.experimental.pallas import tpu as pltpu


def _round_up(x, m):
    return (x + m - 1) // m * m


def lstm_kernel(x_ref, h_ref, c_ref,
                wx_ref, wh_ref, bg_ref,
                wo_ref, bo_ref,
                out_ref, h_out_ref, c_out_ref, *, out_size):
    Hp = h_ref.shape[1]                              # lane-padded hidden width

    # MXU operands in bf16; accumulate + elementwise math in f32.
    x_bf = x_ref[...].astype(jnp.bfloat16)           # [BB, I]
    h_bf = h_ref[...].astype(jnp.bfloat16)           # [BB, Hp]
    c_prev = c_ref[...]                               # [BB, Hp] f32

    # Fused gate projection: one lane-dense [BB, 4*Hp] slab (f | i | u | o).
    gates = (jnp.dot(x_bf, wx_ref[...], preferred_element_type=jnp.float32)
             + jnp.dot(h_bf, wh_ref[...], preferred_element_type=jnp.float32)
             + bg_ref[...])                           # [BB, 4*Hp] f32

    # Lane-aligned 128-wide slices (Hp is a multiple of 128).
    forget   = jax.nn.sigmoid(gates[:, 0 * Hp:1 * Hp])
    in_gate  = jax.nn.sigmoid(gates[:, 1 * Hp:2 * Hp])
    update   = jnp.tanh(gates[:, 2 * Hp:3 * Hp])
    out_gate = jax.nn.sigmoid(gates[:, 3 * Hp:4 * Hp])

    # State update (padded hidden lanes stay exactly zero).
    c_new = forget * c_prev + in_gate * update        # [BB, Hp]
    h_new = out_gate * jnp.tanh(c_new)                # [BB, Hp]

    # Output projection into a lane-dense padded [BB, O_pad] slab.
    logits = (jnp.dot(h_new.astype(jnp.bfloat16), wo_ref[...],
                      preferred_element_type=jnp.float32)
              + bo_ref[...])                          # [BB, O_pad]

    # Mask padded logit lanes so log-softmax matches the unpadded module.
    lane = jax.lax.broadcasted_iota(jnp.int32, logits.shape, 1)
    logits = jnp.where(lane < out_size, logits, jnp.float32(-1e30))

    m = jnp.max(logits, axis=1, keepdims=True)
    shifted = logits - m
    lse = jnp.log(jnp.sum(jnp.exp(shifted), axis=1, keepdims=True))

    out_ref[...] = (shifted - lse).astype(out_ref.dtype)
    h_out_ref[...] = h_new.astype(h_out_ref.dtype)
    c_out_ref[...] = c_new.astype(c_out_ref.dtype)


@functools.partial(jax.jit, static_argnames=("output_size",))
def lstm_forward(x, h, c, params, *, output_size):
    """One LSTM-cell step. x:[B,I], h:[B,H], c:[B,H] -> (log_probs, h_new, c_new)."""
    B, I = x.shape
    H = h.shape[1]
    Hp = params["wh"].shape[0]                 # lane-padded hidden width
    O_pad = params["wo"].shape[1]

    # Batch tiling: big sublane-aligned tiles (fewer grid steps), multiple of 8.
    BB = min(256, _round_up(B, 8))
    B_pad = _round_up(B, BB)

    x_p = jnp.pad(x, ((0, B_pad - B), (0, 0)))
    h_p = jnp.pad(h, ((0, B_pad - B), (0, Hp - H)))
    c_p = jnp.pad(c, ((0, B_pad - B), (0, Hp - H)))

    def batch_spec(cols):
        return pl.BlockSpec((BB, cols), lambda b: (b, 0))

    def const_spec(arr):
        return pl.BlockSpec(arr.shape, lambda b: (0, 0))

    kernel = functools.partial(lstm_kernel, out_size=output_size)

    out_shapes = (jax.ShapeDtypeStruct((B_pad, O_pad), jnp.float32),
                  jax.ShapeDtypeStruct((B_pad, Hp), jnp.float32),
                  jax.ShapeDtypeStruct((B_pad, Hp), jnp.float32))

    log_probs_p, h_new_p, c_new_p = pl.pallas_call(
        kernel,
        out_shape=out_shapes,
        grid=(B_pad // BB,),
        in_specs=[batch_spec(I), batch_spec(Hp), batch_spec(Hp),
                  const_spec(params["wx"]), const_spec(params["wh"]),
                  const_spec(params["bg"]),
                  const_spec(params["wo"]), const_spec(params["bo"])],
        out_specs=(batch_spec(O_pad), batch_spec(Hp), batch_spec(Hp)),
        # h and c are updated in place (no fresh HBM buffers per step).
        input_output_aliases={1: 1, 2: 2},
        compiler_params=pltpu.CompilerParams(
            dimension_semantics=("parallel",)),   # batch tiles shard across TCs
    )(x_p, h_p, c_p,
      params["wx"], params["wh"], params["bg"],
      params["wo"], params["bo"])

    return (log_probs_p[:B, :output_size], h_new_p[:B, :H], c_new_p[:B, :H])


def init_params(key, input_size, hidden_size, output_size, *, lane=128):
    """nn.Linear-style init (U(-1/sqrt(fan_in), 1/sqrt(fan_in))) per gate, then
    fused into lane-padded [I,4*Hp] / [Hp,4*Hp] bf16 weights + padded h2o."""
    keys = jax.random.split(key, 10)
    ih = input_size + hidden_size
    H = hidden_size
    Hp = _round_up(H, lane)
    Op = _round_up(output_size, lane)

    def lin(kw, kb, fan_in, fan_out):
        bound = 1.0 / jnp.sqrt(jnp.float32(fan_in))
        w = jax.random.uniform(kw, (fan_in, fan_out), jnp.float32, -bound, bound)
        b = jax.random.uniform(kb, (1, fan_out), jnp.float32, -bound, bound)
        return w, b

    # Four gate Linears (forget, input, update, output), each padded H -> Hp
    # with zero weights/bias (keeps padded hidden lanes exactly zero).
    gate_ws, gate_bs = [], []
    for g in range(4):
        w, b = lin(keys[2 * g], keys[2 * g + 1], ih, H)
        gate_ws.append(jnp.pad(w, ((0, 0), (0, Hp - H))))
        gate_bs.append(jnp.pad(b, ((0, 0), (0, Hp - H))))
    w4 = jnp.concatenate(gate_ws, axis=1)                 # [I+H, 4*Hp]
    b4 = jnp.concatenate(gate_bs, axis=1)                 # [1, 4*Hp]

    wx = w4[:input_size, :]                                # [I, 4*Hp]
    wh = jnp.pad(w4[input_size:, :], ((0, Hp - H), (0, 0)))  # [Hp, 4*Hp]

    # h2o projection padded to lane-dense output width (masked in-kernel).
    wh2o, bh2o = lin(keys[8], keys[9], H, output_size)
    wo = jnp.pad(wh2o, ((0, Hp - H), (0, Op - output_size)))  # [Hp, Op]
    bo = jnp.pad(bh2o, ((0, 0), (0, Op - output_size)))       # [1, Op]

    return dict(wx=wx.astype(jnp.bfloat16),
                wh=wh.astype(jnp.bfloat16),
                bg=b4,                                      # f32
                wo=wo.astype(jnp.bfloat16),
                bo=bo)                                      # f32


def _reference(x, h, c, params, hidden_size, output_size):
    """Plain-JAX reference with the same (padded, bf16) packed params."""
    Hp = params["wh"].shape[0]
    h_p = jnp.pad(h, ((0, 0), (0, Hp - h.shape[1])))
    c_p = jnp.pad(c, ((0, 0), (0, Hp - c.shape[1])))

    gates = (jnp.dot(x.astype(jnp.bfloat16), params["wx"],
                     preferred_element_type=jnp.float32)
             + jnp.dot(h_p.astype(jnp.bfloat16), params["wh"],
                       preferred_element_type=jnp.float32)
             + params["bg"])
    f = jax.nn.sigmoid(gates[:, 0 * Hp:1 * Hp])
    i = jax.nn.sigmoid(gates[:, 1 * Hp:2 * Hp])
    u = jnp.tanh(gates[:, 2 * Hp:3 * Hp])
    o = jax.nn.sigmoid(gates[:, 3 * Hp:4 * Hp])
    c_new = f * c_p + i * u
    h_new = o * jnp.tanh(c_new)
    logits = (jnp.dot(h_new.astype(jnp.bfloat16), params["wo"],
                      preferred_element_type=jnp.float32)
              + params["bo"])[:, :output_size]
    log_probs = jax.nn.log_softmax(logits, axis=1)
    return log_probs, h_new[:, :hidden_size], c_new[:, :hidden_size]


if __name__ == "__main__":
    B, INPUT, HIDDEN, OUTPUT = 2, 16, 32, 8

    key = jax.random.PRNGKey(0)
    k_x, k_p = jax.random.split(key)

    x = jax.random.normal(k_x, (B, INPUT), jnp.float32)
    h0 = jnp.zeros((B, HIDDEN), jnp.float32)   # initHidden (broadcast to batch)
    c0 = jnp.zeros((B, HIDDEN), jnp.float32)   # initCellState
    params = init_params(k_p, INPUT, HIDDEN, OUTPUT)

    log_probs, h1, c1 = lstm_forward(x, h0, c0, params, output_size=OUTPUT)
    jax.block_until_ready((log_probs, h1, c1))

    # sanity: shapes + log-softmax rows sum to 1 in prob space
    assert log_probs.shape == (B, OUTPUT)
    assert h1.shape == (B, HIDDEN) and c1.shape == (B, HIDDEN)
    assert jnp.allclose(jnp.sum(jnp.exp(log_probs), axis=1), 1.0, atol=1e-4)

    # reference check (loose tolerance: bf16 matmuls + transcendental approx)
    ref_lp, ref_h, ref_c = _reference(x, h0, c0, params, HIDDEN, OUTPUT)
    assert jnp.allclose(log_probs, ref_lp, atol=1e-2, rtol=1e-2)
    assert jnp.allclose(h1, ref_h, atol=1e-2, rtol=1e-2)
    assert jnp.allclose(c1, ref_c, atol=1e-2, rtol=1e-2)

    print("KERNEL_OK")
</pallas_src>

<mosaic_0001>
module attributes {stable_mosaic.version = 11 : i64} {
  func.func @lstm_kernel(%arg0: i32, %arg1: memref<8x16xf32, #tpu.memory_space<vmem>>, %arg2: memref<8x128xf32, #tpu.memory_space<vmem>>, %arg3: memref<8x128xf32, #tpu.memory_space<vmem>>, %arg4: memref<16x512xbf16, #tpu.memory_space<vmem>>, %arg5: memref<128x512xbf16, #tpu.memory_space<vmem>>, %arg6: memref<1x512xf32, #tpu.memory_space<vmem>>, %arg7: memref<128x128xbf16, #tpu.memory_space<vmem>>, %arg8: memref<1x128xf32, #tpu.memory_space<vmem>>, %arg9: memref<8x128xf32, #tpu.memory_space<vmem>>, %arg10: memref<8x128xf32, #tpu.memory_space<vmem>>, %arg11: memref<8x128xf32, #tpu.memory_space<vmem>>) attributes {dimension_semantics = [#tpu.dimension_semantics<parallel>], iteration_bounds = array<i64: 1>, scalar_prefetch = 0 : i64, scratch_operands = 0 : i64, tpu.core_type = #tpu.core_type<tc>, window_params = [{transform_indices = @transform_0, window_bounds = array<i64: 8, 16>}, {transform_indices = @transform_1, window_bounds = array<i64: 8, 128>}, {transform_indices = @transform_2, window_bounds = array<i64: 8, 128>}, {pipeline_mode = #tpu.pipeline_mode<synchronous>, transform_indices = @transform_3, window_bounds = array<i64: 16, 512>}, {pipeline_mode = #tpu.pipeline_mode<synchronous>, transform_indices = @transform_4, window_bounds = array<i64: 128, 512>}, {pipeline_mode = #tpu.pipeline_mode<synchronous>, transform_indices = @transform_5, window_bounds = array<i64: 1, 512>}, {pipeline_mode = #tpu.pipeline_mode<synchronous>, transform_indices = @transform_6, window_bounds = array<i64: 128, 128>}, {pipeline_mode = #tpu.pipeline_mode<synchronous>, transform_indices = @transform_7, window_bounds = array<i64: 1, 128>}, {transform_indices = @transform_8, window_bounds = array<i64: 8, 128>}, {transform_indices = @transform_9, window_bounds = array<i64: 8, 128>}, {transform_indices = @transform_10, window_bounds = array<i64: 8, 128>}]} {
    %c0 = arith.constant 0 : index
    %c0_0 = arith.constant 0 : index
    %0 = vector.load %arg1[%c0, %c0_0] : memref<8x16xf32, #tpu.memory_space<vmem>>, vector<8x16xf32>
    %1 = arith.truncf %0 : vector<8x16xf32> to vector<8x16xbf16>
    %c0_1 = arith.constant 0 : index
    %c0_2 = arith.constant 0 : index
    %2 = vector.load %arg2[%c0_1, %c0_2] : memref<8x128xf32, #tpu.memory_space<vmem>>, vector<8x128xf32>
    %3 = arith.truncf %2 : vector<8x128xf32> to vector<8x128xbf16>
    %c0_3 = arith.constant 0 : index
    %c0_4 = arith.constant 0 : index
    %4 = vector.load %arg3[%c0_3, %c0_4] : memref<8x128xf32, #tpu.memory_space<vmem>>, vector<8x128xf32>
    %c0_5 = arith.constant 0 : index
    %c0_6 = arith.constant 0 : index
    %5 = vector.load %arg4[%c0_5, %c0_6] : memref<16x512xbf16, #tpu.memory_space<vmem>>, vector<16x512xbf16>
    %cst = arith.constant dense<0.000000e+00> : vector<8x512xf32>
    %6 = tpu.matmul %1, %5, %cst {dimension_numbers = #tpu.dot_dimension_numbers<[1], [0], [0], [1], [0, 0, 1, 1], [], []>} : vector<8x16xbf16>, vector<16x512xbf16>, vector<8x512xf32> -> vector<8x512xf32>
    %c0_7 = arith.constant 0 : index
    %c0_8 = arith.constant 0 : index
    %7 = vector.load %arg5[%c0_7, %c0_8] : memref<128x512xbf16, #tpu.memory_space<vmem>>, vector<128x512xbf16>
    %cst_9 = arith.constant dense<0.000000e+00> : vector<8x512xf32>
    %8 = tpu.matmul %3, %7, %cst_9 {dimension_numbers = #tpu.dot_dimension_numbers<[1], [0], [0], [1], [0, 0, 1, 1], [], []>} : vector<8x128xbf16>, vector<128x512xbf16>, vector<8x512xf32> -> vector<8x512xf32>
    %9 = arith.addf %6, %8 : vector<8x512xf32>
    %c0_10 = arith.constant 0 : index
    %c0_11 = arith.constant 0 : index
    %10 = vector.load %arg6[%c0_10, %c0_11] : memref<1x512xf32, #tpu.memory_space<vmem>>, vector<1x512xf32>
    %11 = vector.broadcast %10 : vector<1x512xf32> to vector<8x512xf32>
    %12 = arith.addf %9, %11 : vector<8x512xf32>
    %13 = vector.extract_strided_slice %12 {offsets = [0, 0], sizes = [8, 128], strides = [1, 1]} : vector<8x512xf32> to vector<8x128xf32>
    %14 = arith.negf %13 : vector<8x128xf32>
    %15 = math.exp %14 : vector<8x128xf32>
    %cst_12 = arith.constant 1.000000e+00 : f32
    %16 = vector.broadcast %cst_12 : f32 to vector<8x128xf32>
    %17 = arith.addf %16, %15 : vector<8x128xf32>
    %18 = arith.divf %16, %17 : vector<8x128xf32>
    %19 = vector.extract_strided_slice %12 {offsets = [0, 128], sizes = [8, 128], strides = [1, 1]} : vector<8x512xf32> to vector<8x128xf32>
    %20 = arith.negf %19 : vector<8x128xf32>
    %21 = math.exp %20 : vector<8x128xf32>
    %cst_13 = arith.constant 1.000000e+00 : f32
    %22 = vector.broadcast %cst_13 : f32 to vector<8x128xf32>
    %23 = arith.addf %22, %21 : vector<8x128xf32>
    %24 = arith.divf %22, %23 : vector<8x128xf32>
    %25 = vector.extract_strided_slice %12 {offsets = [0, 256], sizes = [8, 128], strides = [1, 1]} : vector<8x512xf32> to vector<8x128xf32>
    %26 = math.tanh %25 : vector<8x128xf32>
    %27 = vector.extract_strided_slice %12 {offsets = [0, 384], sizes = [8, 128], strides = [1, 1]} : vector<8x512xf32> to vector<8x128xf32>
    %28 = arith.negf %27 : vector<8x128xf32>
    %29 = math.exp %28 : vector<8x128xf32>
    %cst_14 = arith.constant 1.000000e+00 : f32
    %30 = vector.broadcast %cst_14 : f32 to vector<8x128xf32>
    %31 = arith.addf %30, %29 : vector<8x128xf32>
    %32 = arith.divf %30, %31 : vector<8x128xf32>
    %33 = arith.mulf %18, %4 : vector<8x128xf32>
    %34 = arith.mulf %24, %26 : vector<8x128xf32>
    %35 = arith.addf %33, %34 : vector<8x128xf32>
    %36 = math.tanh %35 : vector<8x128xf32>
    %37 = arith.mulf %32, %36 : vector<8x128xf32>
    %38 = arith.truncf %37 : vector<8x128xf32> to vector<8x128xbf16>
    %c0_15 = arith.constant 0 : index
    %c0_16 = arith.constant 0 : index
    %39 = vector.load %arg7[%c0_15, %c0_16] : memref<128x128xbf16, #tpu.memory_space<vmem>>, vector<128x128xbf16>
    %cst_17 = arith.constant dense<0.000000e+00> : vector<8x128xf32>
    %40 = tpu.matmul %38, %39, %cst_17 {dimension_numbers = #tpu.dot_dimension_numbers<[1], [0], [0], [1], [0, 0, 1, 1], [], []>} : vector<8x128xbf16>, vector<128x128xbf16>, vector<8x128xf32> -> vector<8x128xf32>
    %c0_18 = arith.constant 0 : index
    %c0_19 = arith.constant 0 : index
    %41 = vector.load %arg8[%c0_18, %c0_19] : memref<1x128xf32, #tpu.memory_space<vmem>>, vector<1x128xf32>
    %42 = vector.broadcast %41 : vector<1x128xf32> to vector<8x128xf32>
    %43 = arith.addf %40, %42 : vector<8x128xf32>
    %44 = tpu.iota {dimensions = array<i32: 1>} : vector<8x128xi32>
    %c8_i32 = arith.constant 8 : i32
    %45 = vector.broadcast %c8_i32 : i32 to vector<8x128xi32>
    %46 = arith.cmpi slt, %44, %45 : vector<8x128xi32>
    %cst_20 = arith.constant -1.000000e+30 : f32
    %47 = vector.broadcast %cst_20 : f32 to vector<8x128xf32>
    %48 = arith.select %46, %43, %47 : vector<8x128xi1>, vector<8x128xf32>
    %cst_21 = arith.constant dense<0xFF800000> : vector<8xf32>
    %49 = vector.multi_reduction <maximumf>, %48, %cst_21 [1] : vector<8x128xf32> to vector<8xf32>
    %50 = vector.shape_cast %49 : vector<8xf32> to vector<8x1xf32>
    %51 = vector.broadcast %50 : vector<8x1xf32> to vector<8x128xf32>
    %52 = arith.subf %48, %51 : vector<8x128xf32>
    %53 = math.exp %52 : vector<8x128xf32>
    %cst_22 = arith.constant dense<0.000000e+00> : vector<8xf32>
    %54 = vector.multi_reduction <add>, %53, %cst_22 [1] : vector<8x128xf32> to vector<8xf32>
    %55 = vector.shape_cast %54 : vector<8xf32> to vector<8x1xf32>
    %56 = math.log %55 : vector<8x1xf32>
    %57 = vector.broadcast %56 : vector<8x1xf32> to vector<8x128xf32>
    %58 = arith.subf %52, %57 : vector<8x128xf32>
    %c0_23 = arith.constant 0 : index
    %c0_24 = arith.constant 0 : index
    %59 = vector.load %arg9[%c0_23, %c0_24] : memref<8x128xf32, #tpu.memory_space<vmem>>, vector<8x128xf32>
    tpu.vector_store %arg9[%c0_23, %c0_24], %58 {strides = array<i32>} : memref<8x128xf32, #tpu.memory_space<vmem>>, vector<8x128xf32>,
    %c0_25 = arith.constant 0 : index
    %c0_26 = arith.constant 0 : index
    %60 = vector.load %arg10[%c0_25, %c0_26] : memref<8x128xf32, #tpu.memory_space<vmem>>, vector<8x128xf32>
    tpu.vector_store %arg10[%c0_25, %c0_26], %37 {strides = array<i32>} : memref<8x128xf32, #tpu.memory_space<vmem>>, vector<8x128xf32>,
    %c0_27 = arith.constant 0 : index
    %c0_28 = arith.constant 0 : index
    %61 = vector.load %arg11[%c0_27, %c0_28] : memref<8x128xf32, #tpu.memory_space<vmem>>, vector<8x128xf32>
    tpu.vector_store %arg11[%c0_27, %c0_28], %35 {strides = array<i32>} : memref<8x128xf32, #tpu.memory_space<vmem>>, vector<8x128xf32>,
    return
  }
  func.func @transform_0(%arg0: i32) -> (i32, i32) {
    %c0_i32 = arith.constant 0 : i32
    %c0_i32_0 = arith.constant 0 : i32
    return %arg0, %c0_i32 : i32, i32
  }
  func.func @transform_1(%arg0: i32) -> (i32, i32) {
    %c0_i32 = arith.constant 0 : i32
    %c0_i32_0 = arith.constant 0 : i32
    return %arg0, %c0_i32 : i32, i32
  }
  func.func @transform_2(%arg0: i32) -> (i32, i32) {
    %c0_i32 = arith.constant 0 : i32
    %c0_i32_0 = arith.constant 0 : i32
    return %arg0, %c0_i32 : i32, i32
  }
  func.func @transform_3(%arg0: i32) -> (i32, i32) {
    %c0_i32 = arith.constant 0 : i32
    %c0_i32_0 = arith.constant 0 : i32
    %c0_i32_1 = arith.constant 0 : i32
    return %c0_i32, %c0_i32_0 : i32, i32
  }
  func.func @transform_4(%arg0: i32) -> (i32, i32) {
    %c0_i32 = arith.constant 0 : i32
    %c0_i32_0 = arith.constant 0 : i32
    %c0_i32_1 = arith.constant 0 : i32
    return %c0_i32, %c0_i32_0 : i32, i32
  }
  func.func @transform_5(%arg0: i32) -> (i32, i32) {
    %c0_i32 = arith.constant 0 : i32
    %c0_i32_0 = arith.constant 0 : i32
    %c0_i32_1 = arith.constant 0 : i32
    return %c0_i32, %c0_i32_0 : i32, i32
  }
  func.func @transform_6(%arg0: i32) -> (i32, i32) {
    %c0_i32 = arith.constant 0 : i32
    %c0_i32_0 = arith.constant 0 : i32
    %c0_i32_1 = arith.constant 0 : i32
    return %c0_i32, %c0_i32_0 : i32, i32
  }
  func.func @transform_7(%arg0: i32) -> (i32, i32) {
    %c0_i32 = arith.constant 0 : i32
    %c0_i32_0 = arith.constant 0 : i32
    %c0_i32_1 = arith.constant 0 : i32
    return %c0_i32, %c0_i32_0 : i32, i32
  }
  func.func @transform_8(%arg0: i32) -> (i32, i32) {
    %c0_i32 = arith.constant 0 : i32
    %c0_i32_0 = arith.constant 0 : i32
    return %arg0, %c0_i32 : i32, i32
  }
  func.func @transform_9(%arg0: i32) -> (i32, i32) {
    %c0_i32 = arith.constant 0 : i32
    %c0_i32_0 = arith.constant 0 : i32
    return %arg0, %c0_i32 : i32, i32
  }
  func.func @transform_10(%arg0: i32) -> (i32, i32) {
    %c0_i32 = arith.constant 0 : i32
    %c0_i32_0 = arith.constant 0 : i32
    return %arg0, %c0_i32 : i32, i32
  }
}

</mosaic_0001>

<bundles_post_ra>
// kernel: lstm_forward.1
= control target key start
LH: loop header
LB: loop body
LE: loop exit
PB: predicated region body
PF: predicated region fallthrough
CT: control target
= control target key end

     0   :  { %16 = vsyncpa [#allocation3], 0  ;;  %s969_s0 = inlined_call_operand.vmem [shape: f32[8,16], index: 0, kind: input, shape index: {}]   ;;  %s970_s1 = inlined_call_operand.vmem [shape: f32[8,128], index: 1, kind: input, shape index: {}, may-alias: {1,9}]   ;;  %s971_s2 = inlined_call_operand.vmem [shape: f32[8,128], index: 2, kind: input, shape index: {}, may-alias: {2,10}]   ;;  %s972_s3 = inlined_call_operand.vmem [shape: bf16[16,512], index: 3, kind: input, shape index: {}]   ;;  %s973_s4 = inlined_call_operand.hbm [shape: bf16[128,512], index: 4, kind: input, shape index: {}]   ;;  %s974_s5 = inlined_call_operand.vmem [shape: f32[1,512], index: 5, kind: input, shape index: {}]   ;;  %s975_s6 = inlined_call_operand.hbm [shape: bf16[128,128], index: 6, kind: input, shape index: {}]   ;;  %s976_s7 = inlined_call_operand.vmem [shape: f32[1,128], index: 7, kind: input, shape index: {}]   ;;  %s977_s8 = inlined_call_operand.vmem [shape: f32[8,128], index: 8, kind: output, shape index: {0}]   ;;  %s978_s9 = inlined_call_operand.vmem [shape: f32[8,128], index: 9, kind: output, shape index: {1}, may-alias: {1,9}]   ;;  %s979_s10 = inlined_call_operand.vmem [shape: f32[8,128], index: 10, kind: output, shape index: {2}, may-alias: {2,10}]  }
   0x1   :  { %17 = vsyncpa [#allocation5], 0  ;;  %s857_s13 = smov [#allocation2]  }
   0x2   :  { %s31_s14 = sshll.u32 %s857_s13, 4  ;;  %s32_s14 = int_to_ptr.vmem [resolvable:$true] %s31_s14 }
   0x3   :  { %s821_s15 = scalar_lea.vmem %s32_s14, 4096  ;;  %p826_p1 = scmp.lt.s32.totalorder %s32_s14, %s32_s14 }
   0x4   :  { %p822_p0 = scmp.ne.s32.totalorder %s32_s14, %s821_s15  ;;  %p827_p2 = scmp.lt.s32.totalorder %s821_s15, %s821_s15 }
   0x6   :  { %p828_p3 = por %p827_p2, %p826_p1 }
   0x8   :  { %p829_p4 = pnand %p828_p3, %p822_p0 }
   0xa   :  { %832 = shalt.err (!%p829_p4)
}
   0xb   :  { %s858_s16 = smov 256   ;;  %s859_s17 = smov 16  }
   0xc   :  { %37 = dma.hbm_to_vmem [thread:$0]  %s973_s4, 4096, %s32_s14, [#allocation3], %s858_s16, %s858_s16, %s859_s17  }
   0xd   :  { %s860_s20 = smov [#allocation4]  }
   0xe   :  { %s45_s21 = sshll.u32 %s860_s20, 4  ;;  %s46_s21 = int_to_ptr.vmem [resolvable:$true] %s45_s21 }
   0xf   :  { %s841_s22 = scalar_lea.vmem %s46_s21, 1024  ;;  %p846_p6 = scmp.lt.s32.totalorder %s46_s21, %s46_s21 }
  0x10   :  { %p842_p5 = scmp.ne.s32.totalorder %s46_s21, %s841_s22  ;;  %p847_p7 = scmp.lt.s32.totalorder %s841_s22, %s841_s22 }
  0x12   :  { %p848_p8 = por %p847_p7, %p846_p6 }
  0x14   :  { %p849_p9 = pnand %p848_p8, %p842_p5 }
  0x16   :  { %852 = shalt.err (!%p849_p9)
}
  0x17   :  { %s861_s23 = smov 64   ;;  %s862_s24 = smov 4  }
  0x18   :  { %51 = dma.hbm_to_vmem [thread:$0]  %s975_s6, 1024, %s46_s21, [#allocation5], %s861_s23, %s861_s23, %s862_s24  }
  0x19   :  { %853 = dma.done.wait [#allocation3], 4096  }
  0x1a   :  { %854 = vsyncadd [#allocation3], 4294963200 }
  0x1b   :  { %855 = dma.done.wait [#allocation5], 1024  }
  0x1c   :  { %856 = vsyncadd [#allocation5], 4294966272  ;;  %v863_v0 = vmov 0   ;;  %v731_v1 = vld [vmem:[#allocation2 + $0xec] ss:$16 sps:$4 sm:$0xff]   ;;  %v63_v32 = vld [vmem:[%s970_s1] sm:$0xff]  ;;  %v452_v50 = vlaneseq }
  0x1d   :  { %335 = vmatprep.mubr.bf16.mxu1 %v863_v0  ;;  %294 = vmatprep.mubr.bf16.mxu0 %v863_v0  ;;  %v733_v2 = vld [vmem:[#allocation2 + $0xe8] ss:$16 sps:$4 sm:$0xff]   ;;  %v734_v3 = vld [vmem:[#allocation2 + $0xe4] ss:$16 sps:$4 sm:$0xff]   ;;  %v736_v4 = vld [vmem:[#allocation2 + $0xe0] ss:$16 sps:$4 sm:$0xff]   ;;  %v64_v35 = vpack.c.bf16 %v63_v32, %v63_v32 }
  0x1e   :  { %303 = vmatprep.subr.bf16.mxu1 %v731_v1  ;;  %v737_v5 = vld [vmem:[#allocation2 + $0xcc] ss:$16 sps:$4 sm:$0xff]   ;;  %v739_v6 = vld [vmem:[#allocation2 + $0xc8] ss:$16 sps:$4 sm:$0xff]   ;;  %262 = vmatprep.subr.bf16.mxu0 %v734_v3  ;;  %v740_v7 = vld [vmem:[#allocation2 + $0xc4] ss:$16 sps:$4 sm:$0xff]  }
  0x1f   :  { %304 = vmatpush1.bf16.msra.mxu1 %v733_v2  ;;  %263 = vmatpush1.bf16.msra.mxu0 %v736_v4  ;;  %v742_v8 = vld [vmem:[#allocation2 + $0xc0] ss:$16 sps:$4 sm:$0xff]   ;;  %v743_v9 = vld [vmem:[#allocation2 + $0xac] ss:$16 sps:$4 sm:$0xff]   ;;  %v745_v10 = vld [vmem:[#allocation2 + $0xa8] ss:$16 sps:$4 sm:$0xff]  }
  0x20   :  { %305 = vmatprep.subr.bf16.mxu1 %v737_v5  ;;  %264 = vmatprep.subr.bf16.mxu0 %v740_v7  ;;  %v746_v11 = vld [vmem:[#allocation2 + $0xa4] ss:$16 sps:$4 sm:$0xff]   ;;  %v749_v12 = vld [vmem:[#allocation2 + $0x8c] ss:$16 sps:$4 sm:$0xff]   ;;  %v748_v13 = vld [vmem:[#allocation2 + $0xa0] ss:$16 sps:$4 sm:$0xff]  }
  0x21   :  { %v752_v14 = vld [vmem:[#allocation2 + $0x84] ss:$16 sps:$4 sm:$0xff]   ;;  %v751_v15 = vld [vmem:[#allocation2 + $0x88] ss:$16 sps:$4 sm:$0xff]   ;;  %v755_v16 = vld [vmem:[#allocation2 + $0x6c] ss:$16 sps:$4 sm:$0xff]  }
  0x22   :  { %v754_v17 = vld [vmem:[#allocation2 + $0x80] ss:$16 sps:$4 sm:$0xff]   ;;  %v758_v18 = vld [vmem:[#allocation2 + $0x64] ss:$16 sps:$4 sm:$0xff]   ;;  %v757_v19 = vld [vmem:[#allocation2 + $0x68] ss:$16 sps:$4 sm:$0xff]  }
  0x23   :  { %306 = vmatpush1.bf16.msra.mxu1 %v739_v6  ;;  %265 = vmatpush1.bf16.msra.mxu0 %v742_v8  ;;  %v761_v20 = vld [vmem:[#allocation2 + $0x4c] ss:$16 sps:$4 sm:$0xff]   ;;  %v760_v21 = vld [vmem:[#allocation2 + $0x60] ss:$16 sps:$4 sm:$0xff]   ;;  %v764_v22 = vld [vmem:[#allocation2 + $0x44] ss:$16 sps:$4 sm:$0xff]  }
  0x24   :  { %307 = vmatprep.subr.bf16.mxu1 %v743_v9  ;;  %266 = vmatprep.subr.bf16.mxu0 %v746_v11  ;;  %v763_v23 = vld [vmem:[#allocation2 + $0x48] ss:$16 sps:$4 sm:$0xff]   ;;  %v767_v24 = vld [vmem:[#allocation2 + $0x2c] ss:$16 sps:$4 sm:$0xff]   ;;  %v766_v25 = vld [vmem:[#allocation2 + $0x40] ss:$16 sps:$4 sm:$0xff]  }
  0x25   :  { %v769_v26 = vld [vmem:[#allocation2 + $0x28] ss:$16 sps:$4 sm:$0xff]   ;;  %v770_v27 = vld [vmem:[#allocation2 + $0x24] ss:$16 sps:$4 sm:$0xff]   ;;  %v772_v28 = vld [vmem:[#allocation2 + $0x20] ss:$16 sps:$4 sm:$0xff]  }
  0x26   :  { %v773_v29 = vld [vmem:[#allocation2 + $0xc] ss:$16 sps:$4 sm:$0xff]   ;;  %v776_v30 = vld [vmem:[#allocation2 + $0x4] ss:$16 sps:$4 sm:$0xff]   ;;  %v775_v31 = vld [vmem:[#allocation2 + $0x8] ss:$16 sps:$4 sm:$0xff]  }
  0x27   :  { %308 = vmatpush1.bf16.msra.mxu1 %v745_v10  ;;  %267 = vmatpush1.bf16.msra.mxu0 %v748_v13  ;;  %v781_v33 = vld [vmem:[%s972_s3 + $0x4] ss:$16 sps:$4 sm:$0xff]   ;;  %v778_v34 = vld [vmem:[#allocation2] ss:$16 sps:$4 sm:$0xff]   ;;  %v784_v37 = vld [vmem:[%s972_s3 + $0xc] ss:$16 sps:$4 sm:$0xff]  }
  0x28   :  { %309 = vmatprep.subr.bf16.mxu1 %v749_v12  ;;  %268 = vmatprep.subr.bf16.mxu0 %v752_v14  ;;  %v779_v36 = vld [vmem:[%s972_s3] ss:$16 sps:$4 sm:$0xff]   ;;  %vm364_vm0 = vcmask 130048   ;;  %v782_v40 = vld [vmem:[%s972_s3 + $0x8] ss:$16 sps:$4 sm:$0xff]   ;;  %v864_v42 = vmov 0.0  }
  0x29   :  { %v61_v38 = vld [vmem:[%s969_s0] sm:$0xff]  ;;  %v785_v41 = vld [vmem:[#allocation4 + $0x38] sm:$0xff]   ;;  %v786_v43 = vld [vmem:[#allocation4 + $0x30] sm:$0xff]   ;;  %vm865_vm1 = vmmov 0   ;;  %v453_v51 = vshrl.u32 %v452_v50, 7 }
  0x2a   :  { %v62_v39 = vpack.c.bf16 %v61_v38, %v61_v38  ;;  %v787_v44 = vld [vmem:[#allocation4 + $0x28] sm:$0xff]   ;;  %v788_v45 = vld [vmem:[#allocation4 + $0x20] sm:$0xff]   ;;  %v789_v46 = vld [vmem:[#allocation4 + $0x18] sm:$0xff]  }
  0x2b   :  { %310 = vmatpush1.bf16.msra.mxu1 %v751_v15  ;;  %269 = vmatpush1.bf16.msra.mxu0 %v754_v17  ;;  %v790_v47 = vld [vmem:[#allocation4 + $0x10] sm:$0xff]   ;;  %v791_v48 = vld [vmem:[#allocation4 + $0x8] sm:$0xff]   ;;  %v792_v49 = vld [vmem:[#allocation4] sm:$0xff]   ;;  %v454_v55 = vsub.s32 0, %v453_v51  ;;  %v458_v59 = vsub.s32 1, %v453_v51  ;;  %v466_v10 = vsub.s32 3, %v453_v51 }
  0x2c   :  { %311 = vmatprep.subr.bf16.mxu1 %v755_v16  ;;  %270 = vmatprep.subr.bf16.mxu0 %v758_v18  ;;  %v450_v58 = vld [vmem:[%s974_s5] sm:$0xf]  ;;  %v462_v16 = vsub.s32 2, %v453_v51 }
  0x2d   :  { %v455_v62 = vrot.slane %v450_v58, %v454_v55  ;;  %v459_v2 = vrot.slane %v450_v58, %v458_v59  ;;  %v467_v14 = vrot.slane %v450_v58, %v466_v10 }
  0x2f   :  { %312 = vmatpush1.bf16.msra.mxu1 %v757_v19  ;;  %271 = vmatpush1.bf16.msra.mxu0 %v760_v21  ;;  %v463_v21 = vrot.slane %v450_v58, %v462_v16 }
  0x30   :  { %313 = vmatprep.subr.bf16.mxu1 %v761_v20  ;;  %272 = vmatprep.subr.bf16.mxu0 %v764_v22 }
  0x33   :  { %314 = vmatpush1.bf16.msra.mxu1 %v763_v23  ;;  %273 = vmatpush1.bf16.msra.mxu0 %v766_v25 }
  0x34   :  { %315 = vmatprep.subr.bf16.mxu1 %v767_v24  ;;  %274 = vmatprep.subr.bf16.mxu0 %v770_v27 }
  0x37   :  { %316 = vmatpush1.bf16.msra.mxu1 %v769_v26  ;;  %275 = vmatpush1.bf16.msra.mxu0 %v772_v28 }
  0x38   :  { %317 = vmatprep.subr.bf16.mxu1 %v773_v29  ;;  %276 = vmatprep.subr.bf16.mxu0 %v776_v30  ;;  %v65_v30 = vld [vmem:[%s971_s2] sm:$0xff] }
  0x3b   :  { %318 = vmatpush1.bf16.msra.mxu1 %v775_v31  ;;  %277 = vmatpush1.bf16.msra.mxu0 %v778_v34 }
  0x3c   :  { %382 = vmatprep.subr.bf16.mxu1 %v781_v33  ;;  %702 = vmatprep.subr.bf16.mxu0 %v864_v42 }
  0x3e   :  { %336 = vmatmul.mubr.bf16.vlgmr.msra.gmra.mxu1 %v64_v35  ;;  %295 = vmatmul.mubr.bf16.vlgmr.msra.gmra.mxu0 %v64_v35 }
  0x3f   :  { %383 = vmatpush1.bf16.msra.mxu1 %v779_v36  ;;  %400 = vmatprep.mubr.bf16.mxu1 %v863_v0 }
  0x40   :  { %423 = vmatprep.subr.bf16.mxu1 %v784_v37  ;;  %703 = vmatpush3.bf16.msra.mxu0 %v785_v41  ;;  %v613_v41 = vand.u32 127, %v452_v50 }
  0x41   :  { %704 = vmatprep.subr.bf16.mxu0 %v864_v42  ;;  %718 = vmatprep.mubr.msk.bf16.mxu0 %vm865_vm1, %v864_v42 }
  0x42   :  { %vm614_vm2 = vcmp.lt.s32.totalorder %v613_v41, 8 }
  0x44   :  { %705 = vmatpush3.bf16.msra.mxu0 %v786_v43 }
  0x45   :  { %706 = vmatprep.subr.bf16.mxu0 %v864_v42 }
  0x46   :  { %679 = vmatmul.mubr.msk.bf16.vlgmr.msra.gmra.mxu1 %vm364_vm0, %v62_v39 }
  0x47   :  { %424 = vmatpush1.bf16.msra.mxu1 %v782_v40  ;;  %441 = vmatprep.mubr.bf16.mxu1 %v863_v0 }
  0x48   :  { %707 = vmatpush3.bf16.msra.mxu0 %v787_v44 }
  0x49   :  { %708 = vmatprep.subr.bf16.mxu0 %v864_v42 }
  0x4c   :  { %709 = vmatpush3.bf16.msra.mxu0 %v788_v45 }
  0x4d   :  { %710 = vmatprep.subr.bf16.mxu0 %v864_v42 }
  0x4e   :  { %680 = vmatmul.mubr.msk.bf16.vlgmr.msra.gmra.mxu1 %vm364_vm0, %v62_v39 }
  0x50   :  { %711 = vmatpush3.bf16.msra.mxu0 %v789_v46 }
  0x51   :  { %712 = vmatprep.subr.bf16.mxu0 %v864_v42 }
  0x54   :  { %713 = vmatpush3.bf16.msra.mxu0 %v790_v47 }
  0x55   :  { %714 = vmatprep.subr.bf16.mxu0 %v864_v42 }
  0x58   :  { %715 = vmatpush3.bf16.msra.mxu0 %v791_v48 }
  0x59   :  { %716 = vmatprep.subr.bf16.mxu0 %v864_v42  ;;  %v684_v42 = vld [vmem:[%s976_s7] ss:$0 sm:$0xff] }
  0x5c   :  { %717 = vmatpush3.bf16.msra.mxu0 %v792_v49 }
  0xfe   :  { %v337_v52 = vpop.f32.mrf.mxu1  ;;  %v296_v54 = vpop.f32.mrf.mxu0 }
 0x100   :  { %v339_v53 = vpop.f32.mrf.mxu1  ;;  %v298_v57 = vpop.f32.mrf.mxu0 }
 0x102   :  { %v341_v56 = vpop.f32.mrf.mxu1  ;;  %v300_v61 = vpop.f32.mrf.mxu0 }
 0x104   :  { %v342_v60 = vpop.f32.mrf.mxu1  ;;  %v301_v0 = vpop.f32.mrf.mxu0 }
 0x106   :  { %v402_v63 = vpop.f32.mrf.mxu1 }
 0x107   :  { %v403_v1 = vadd.f32 %v402_v63, %v296_v54 }
 0x108   :  { %v404_v3 = vpop.f32.mrf.mxu1 }
 0x109   :  { %v472_v4 = vadd.f32 %v455_v62, %v403_v1  ;;  %v405_v5 = vadd.f32 %v404_v3, %v298_v57 }
 0x10a   :  { %v406_v6 = vpop.f32.mrf.mxu1 }
 0x10b   :  { %v681_v7 = vmul.f32 -1.442695, %v472_v4  ;;  %v473_v8 = vadd.f32 %v459_v2, %v405_v5 }
 0x10c   :  { %v407_v9 = vpop.f32.mrf.mxu1 }
 0x10d   :  { %793 = vpow2.f32 %v681_v7  ;;  %v682_v11 = vmul.f32 -1.442695, %v473_v8 }
 0x10e   :  { %v443_v12 = vpop.f32.mrf.mxu1 }
 0x10f   :  { %795 = vpow2.f32 %v682_v11  ;;  %v444_v20 = vadd.f32 %v443_v12, %v337_v52 }
 0x110   :  { %v445_v13 = vpop.f32.mrf.mxu1 }
 0x111   :  { %v446_v15 = vadd.f32 %v445_v13, %v339_v53  ;;  %v474_v24 = vadd.f32 %v463_v21, %v444_v20 }
 0x112   :  { %v447_v17 = vpop.f32.mrf.mxu1 }
 0x113   :  { %v475_v18 = vadd.f32 %v467_v14, %v446_v15 }
 0x114   :  { %v448_v19 = vpop.f32.mrf.mxu1 }
 0x115   :  { %v683_v22 = vmul.f32 -1.442695, %v475_v18 }
 0x117   :  { %797 = vpow2.f32 %v683_v22 }
 0x11a   :  { %v794_v23 = vpop.eup %793 }
 0x11b   :  { %v479_v25 = vadd.f32 1.0, %v794_v23 }
 0x11c   :  { %v796_v26 = vpop.eup %795 }
 0x11d   :  { %799 = vrcp.f32 %v479_v25  ;;  %v485_v27 = vadd.f32 1.0, %v796_v26 }
 0x11e   :  { %801 = vtanh.f32 %v474_v24 }
 0x11f   :  { %803 = vrcp.f32 %v485_v27 }
 0x124   :  { %v798_v28 = vpop.eup %797 }
 0x125   :  { %v492_v33 = vadd.f32 1.0, %v798_v28 }
 0x127   :  { %805 = vrcp.f32 %v492_v33 }
 0x12a   :  { %v800_v29 = vpop.eup %799 }
 0x12b   :  { %v802_v31 = vpop.eup %801  ;;  %v495_v34 = vmul.f32 %v800_v29, %v65_v30 }
 0x12c   :  { %v804_v32 = vpop.eup %803 }
 0x12d   :  { %v496_v35 = vmul.f32 %v804_v32, %v802_v31 }
 0x12f   :  { %v497_v36 = vadd.f32 %v496_v35, %v495_v34 }
 0x131   :  { %807 = vtanh.f32 %v497_v36  ;;  %628 = vst [vmem:[%s979_s10] sm:$0xff] %v497_v36 }
 0x134   :  { %v806_v37 = vpop.eup %805 }
 0x13e   :  { %v808_v38 = vpop.eup %807 }
 0x13f   :  { %v499_v39 = vmul.f32 %v808_v38, %v806_v37 }
 0x141   :  { %v500_v40 = vpack.c.bf16 %v499_v39, %v499_v39  ;;  %627 = vst [vmem:[%s978_s9] sm:$0xff] %v499_v39 }
 0x143   :  { %719 = vmatmul.mubr.bf16.vlgmr.msra.gmra.mxu0 %v500_v40 }
 0x203   :  { %v606_v43 = vpop.f32.mrf.mxu0 }
 0x204   :  { %v607_v44 = vadd.f32 %v684_v42, %v606_v43 }
 0x205   :  { %v720_v45 = vpop.f32.mrf.mxu0 }
 0x206   :  { %v615_v46 = vsel %vm614_vm2, %v607_v44, -1e+30 }
 0x207   :  { %616 = vmax.xlane.f32.xlu0 %v615_v46  ;;  %v609_v47 = vpop.f32.mrf.mxu0 }
 0x209   :  { %v721_v48 = vpop.f32.mrf.mxu0 }
 0x290   :  { %v617_v49 = vpop.xlane.xlu0 %616 }
 0x291   :  { %v618_v51 = vsub.f32 %v615_v46, %v617_v49 }
 0x293   :  { %v619_v52 = vmul.f32 1.442695, %v618_v51 }
 0x295   :  { %809 = vpow2.f32 %v619_v52 }
 0x2a2   :  { %v810_v53 = vpop.eup %809 }
 0x2a3   :  { %621 = vadd.xlane.f32.xlu0 %v810_v53 }
 0x32c   :  { %v622_v54 = vpop.xlane.xlu0 %621 }
 0x32d   :  { %811 = vlog2.f32 %v622_v54 }
 0x33a   :  { %v812_v50 = vpop.eup %811 }
 0x33b   :  { %v624_v55 = vmul.f32 0.6931472, %v812_v50 }
 0x33d   :  { %v625_v56 = vsub.f32 %v618_v51, %v624_v55 }
 0x33f   :  { %626 = vst [vmem:[%s977_s8] sm:$0xff] %v625_v56 }
 0x340   :  { %641 = vsyncpa [#allocation3], 1 }
 0x341   :  { %642 = vsyncpa [#allocation5], 1 }

</bundles_post_ra>
